<compile_context>
chip_gen: v7x
topology: tpu7x:2x2x1
jax: 0.10.0
libtpu: 0.0.40
codegen_flags: <defaults>
</compile_context>

<pallas_src>
import jax
import jax.numpy as jnp
from jax.experimental import pallas as pl
from jax.experimental.pallas import tpu as pltpu


def qnet_kernel(x_ref, w1_ref, b1_ref, w2_ref, b2_ref, o_ref):
    # Cast x to bf16 in-kernel (VPU pack, hides under the MXU work).
    xb = x_ref[...].astype(jnp.bfloat16)                       # [TB, D_in]
    # fc1, transposed: hT[h, b] = sum_d w1[h, d] * x[b, d]  -> [H, TB]
    h_t = jax.lax.dot_general(
        w1_ref[...], xb,
        dimension_numbers=(((1,), (1,)), ((), ())),             # rhs-transposed (q@kT pattern)
        preferred_element_type=jnp.float32)
    h_t = jnp.maximum(h_t + b1_ref[...], 0.0)                   # [H,1] bias broadcast over lanes
    # fc2, transposed: outT = w2 @ hT -> [D_out, TB]
    out_t = jnp.dot(w2_ref[...], h_t.astype(jnp.bfloat16),
                    preferred_element_type=jnp.float32)
    o_ref[...] = (out_t + b2_ref[...]).astype(o_ref.dtype)


def prepare_params(w1, b1, w2, b2):
    """One-time prep (do this at init, NOT per forward call).

    Takes PyTorch-layout params (w1:[H,D_in], b1:[H], w2:[D_out,H], b2:[D_out])
    and returns bf16 weights + f32 column biases as consumed by the kernel.
    """
    return (w1.astype(jnp.bfloat16),
            b1.reshape(-1, 1).astype(jnp.float32),
            w2.astype(jnp.bfloat16),
            b2.reshape(-1, 1).astype(jnp.float32))


def qnetwork_forward(x, params, *, block_b=4096):
    """x: [B, D_in] f32; params from prepare_params(). Returns [B, D_out] f32."""
    w1b, b1c, w2b, b2c = params
    B, D_in = x.shape
    H = w1b.shape[0]
    D_out = w2b.shape[0]

    def cost(rows):
        flops = 2 * rows * (D_in * H + H * D_out)
        bytes_accessed = (rows * D_in * 4 + w1b.size * 2 + b1c.size * 4
                          + w2b.size * 2 + b2c.size * 4 + D_out * rows * 4)
        return pl.CostEstimate(flops=flops, transcendentals=0,
                               bytes_accessed=bytes_accessed)

    if B <= block_b:
        # Single whole-array VMEM block, no grid: on v5e/v6e (1 TC) a grid is a
        # serial loop; per-step overhead dominates at these sizes. No padding
        # needed anywhere (full-array blocks, [D_out, B] output is lane-dense).
        out_t = pl.pallas_call(
            qnet_kernel,
            out_shape=jax.ShapeDtypeStruct((D_out, B), jnp.float32),
            in_specs=[pl.BlockSpec(memory_space=pltpu.MemorySpace.VMEM)] * 5,
            out_specs=pl.BlockSpec(memory_space=pltpu.MemorySpace.VMEM),
            cost_estimate=cost(B),
        )(x, w1b, b1c, w2b, b2c)
        return out_t.T

    # Huge batch: tile the batch into a small, even number of "parallel" grid
    # steps (>=2 so both v7x TensorCores get work); weights/biases stay
    # VMEM-resident via constant index_maps.
    n_blocks = max(2, pl.cdiv(B, block_b))
    n_blocks += n_blocks & 1                                    # keep it even
    TB = pl.cdiv(pl.cdiv(B, n_blocks), 128) * 128               # lane-dense output tiles
    B_pad = pl.cdiv(B, TB) * TB
    xp = jnp.pad(x, ((0, B_pad - B), (0, 0))) if B_pad != B else x
    out_t = pl.pallas_call(
        qnet_kernel,
        out_shape=jax.ShapeDtypeStruct((D_out, B_pad), jnp.float32),
        grid=(B_pad // TB,),
        in_specs=[
            pl.BlockSpec((TB, D_in), lambda i: (i, 0)),
            pl.BlockSpec((H, D_in), lambda i: (0, 0)),
            pl.BlockSpec((H, 1), lambda i: (0, 0)),
            pl.BlockSpec((D_out, H), lambda i: (0, 0)),
            pl.BlockSpec((D_out, 1), lambda i: (0, 0)),
        ],
        out_specs=pl.BlockSpec((D_out, TB), lambda i: (0, i)),
        compiler_params=pltpu.CompilerParams(
            dimension_semantics=("parallel",),
            vmem_limit_bytes=32 * 1024 * 1024),
        cost_estimate=cost(B_pad),
    )(xp, w1b, b1c, w2b, b2c)
    return out_t[:, :B].T


def qnetwork_reference_f32(x, w1, b1, w2, b2):
    """Plain-JAX f32 reference matching the PyTorch module exactly."""
    h = jnp.maximum(x @ w1.T + b1, 0.0)
    return h @ w2.T + b2


def qnetwork_reference_bf16(x, w1, b1, w2, b2):
    """Reference using the same bf16-in / f32-accumulate math as the kernel."""
    xb = x.astype(jnp.bfloat16)
    h = jnp.dot(xb, w1.astype(jnp.bfloat16).T,
                preferred_element_type=jnp.float32) + b1
    h = jnp.maximum(h, 0.0)
    return jnp.dot(h.astype(jnp.bfloat16), w2.astype(jnp.bfloat16).T,
                   preferred_element_type=jnp.float32) + b2


def init_params(key, input_dim, output_dim, hidden=32):
    """PyTorch-default nn.Linear init, kept in PyTorch layout ([out, in])."""
    k1, k2, k3, k4 = jax.random.split(key, 4)
    bound1 = 1.0 / (input_dim ** 0.5)
    bound2 = 1.0 / (hidden ** 0.5)
    w1 = jax.random.uniform(k1, (hidden, input_dim), jnp.float32, -bound1, bound1)
    b1 = jax.random.uniform(k2, (hidden,), jnp.float32, -bound1, bound1)
    w2 = jax.random.uniform(k3, (output_dim, hidden), jnp.float32, -bound2, bound2)
    b2 = jax.random.uniform(k4, (output_dim,), jnp.float32, -bound2, bound2)
    return w1, b1, w2, b2


if __name__ == "__main__":
    key = jax.random.PRNGKey(0)
    kx, kp, kx2 = jax.random.split(key, 3)

    input_dim = 16    # small state vector
    output_dim = 4    # number of actions
    hidden = 32       # fixed by the module

    w1, b1, w2, b2 = init_params(kp, input_dim, output_dim, hidden)
    params = prepare_params(w1, b1, w2, b2)   # one-time, hoisted out of forward

    # --- small-batch path (single VMEM block, no grid, no padding) ---
    batch = 8
    x = jax.random.normal(kx, (batch, input_dim), jnp.float32)
    out = jax.block_until_ready(qnetwork_forward(x, params))
    assert out.shape == (batch, output_dim)
    assert jnp.allclose(out, qnetwork_reference_bf16(x, w1, b1, w2, b2),
                        atol=2e-3, rtol=2e-3)                    # same bf16 math
    assert jnp.allclose(out, qnetwork_reference_f32(x, w1, b1, w2, b2),
                        atol=5e-2, rtol=5e-2)                    # vs f32 PyTorch math

    # --- batch-tiled grid path (>=2 "parallel" steps, weights VMEM-resident) ---
    batch2 = 512
    x2 = jax.random.normal(kx2, (batch2, input_dim), jnp.float32)
    out2 = jax.block_until_ready(qnetwork_forward(x2, params, block_b=128))
    assert out2.shape == (batch2, output_dim)
    assert jnp.allclose(out2, qnetwork_reference_bf16(x2, w1, b1, w2, b2),
                        atol=2e-3, rtol=2e-3)

    print("KERNEL_OK")
</pallas_src>

<mosaic_0001>
module attributes {stable_mosaic.version = 11 : i64} {
  func.func @qnet_kernel(%arg0: memref<8x16xf32, #tpu.memory_space<vmem>>, %arg1: memref<32x16xbf16, #tpu.memory_space<vmem>>, %arg2: memref<32x1xf32, #tpu.memory_space<vmem>>, %arg3: memref<4x32xbf16, #tpu.memory_space<vmem>>, %arg4: memref<4x1xf32, #tpu.memory_space<vmem>>, %arg5: memref<4x8xf32, #tpu.memory_space<vmem>>) attributes {dimension_semantics = [], scalar_prefetch = 0 : i64, scratch_operands = 0 : i64, tpu.core_type = #tpu.core_type<tc>} {
    %c0 = arith.constant 0 : index
    %c0_0 = arith.constant 0 : index
    %0 = vector.load %arg0[%c0, %c0_0] : memref<8x16xf32, #tpu.memory_space<vmem>>, vector<8x16xf32>
    %1 = arith.truncf %0 : vector<8x16xf32> to vector<8x16xbf16>
    %c0_1 = arith.constant 0 : index
    %c0_2 = arith.constant 0 : index
    %2 = vector.load %arg1[%c0_1, %c0_2] : memref<32x16xbf16, #tpu.memory_space<vmem>>, vector<32x16xbf16>
    %cst = arith.constant dense<0.000000e+00> : vector<32x8xf32>
    %3 = tpu.matmul %2, %1, %cst {dimension_numbers = #tpu.dot_dimension_numbers<[1], [1], [0], [0], [0, 0, 1, 0], [], []>} : vector<32x16xbf16>, vector<8x16xbf16>, vector<32x8xf32> -> vector<32x8xf32>
    %c0_3 = arith.constant 0 : index
    %c0_4 = arith.constant 0 : index
    %4 = vector.load %arg2[%c0_3, %c0_4] : memref<32x1xf32, #tpu.memory_space<vmem>>, vector<32x1xf32>
    %5 = vector.broadcast %4 : vector<32x1xf32> to vector<32x8xf32>
    %6 = arith.addf %3, %5 : vector<32x8xf32>
    %cst_5 = arith.constant 0.000000e+00 : f32
    %7 = vector.broadcast %cst_5 : f32 to vector<32x8xf32>
    %8 = arith.maximumf %6, %7 : vector<32x8xf32>
    %c0_6 = arith.constant 0 : index
    %c0_7 = arith.constant 0 : index
    %9 = vector.load %arg3[%c0_6, %c0_7] : memref<4x32xbf16, #tpu.memory_space<vmem>>, vector<4x32xbf16>
    %10 = arith.truncf %8 : vector<32x8xf32> to vector<32x8xbf16>
    %cst_8 = arith.constant dense<0.000000e+00> : vector<4x8xf32>
    %11 = tpu.matmul %9, %10, %cst_8 {dimension_numbers = #tpu.dot_dimension_numbers<[1], [0], [0], [1], [0, 0, 1, 1], [], []>} : vector<4x32xbf16>, vector<32x8xbf16>, vector<4x8xf32> -> vector<4x8xf32>
    %c0_9 = arith.constant 0 : index
    %c0_10 = arith.constant 0 : index
    %12 = vector.load %arg4[%c0_9, %c0_10] : memref<4x1xf32, #tpu.memory_space<vmem>>, vector<4x1xf32>
    %13 = vector.broadcast %12 : vector<4x1xf32> to vector<4x8xf32>
    %14 = arith.addf %11, %13 : vector<4x8xf32>
    %c0_11 = arith.constant 0 : index
    %c0_12 = arith.constant 0 : index
    %15 = vector.load %arg5[%c0_11, %c0_12] : memref<4x8xf32, #tpu.memory_space<vmem>>, vector<4x8xf32>
    tpu.vector_store %arg5[%c0_11, %c0_12], %14 {strides = array<i32>} : memref<4x8xf32, #tpu.memory_space<vmem>>, vector<4x8xf32>,
    return
  }
}

</mosaic_0001>

<bundles_post_ra>
// kernel: tpu_custom_call.1
= control target key start
LH: loop header
LB: loop body
LE: loop exit
PB: predicated region body
PF: predicated region fallthrough
CT: control target
= control target key end

     0   :  { %vm62_vm0 = vcmask 130048   ;;  %v252_v3 = vmov 0   ;;  %s329_s0 = inlined_call_operand.vmem [shape: f32[8,16], index: 0, kind: input, shape index: {}]   ;;  %s330_s1 = inlined_call_operand.vmem [shape: bf16[32,16], index: 1, kind: input, shape index: {}]   ;;  %s331_s2 = inlined_call_operand.vmem [shape: f32[32,1], index: 2, kind: input, shape index: {}]   ;;  %s332_s3 = inlined_call_operand.vmem [shape: bf16[4,32], index: 3, kind: input, shape index: {}]   ;;  %s333_s4 = inlined_call_operand.vmem [shape: f32[4,1], index: 4, kind: input, shape index: {}]   ;;  %s334_s5 = inlined_call_operand.hbm [shape: f32[4,8], index: 5, kind: output, shape index: {}]  }
   0x1   :  { %v22_v0 = vld [vmem:[%s329_s0] sm:$0xff]  ;;  %224 = vset.pattern.permute.xlu0 %v252_v3  ;;  %225 = vset.pattern.permute.xlu1 %v252_v3  ;;  %v30_v6 = vld [vmem:[%s331_s2 + $0x10] sm:$0xff] }
   0x2   :  { %v23_v1 = vpack.c.bf16 %v22_v0, %v22_v0  ;;  %v226_v2 = vld [vmem:[%s330_s1] sm:$0xff]  }
   0x3   :  { %v28_v4 = vld [vmem:[%s331_s2] sm:$0xff]  ;;  %207 = vmatprep.mubr.msk.bf16.mxu0 %vm62_vm0, %v226_v2 }
   0x4   :  { %219 = vmatprep.subr.msk.bf16.mxu0 %vm62_vm0, %v23_v1  ;;  %v70_v5 = vsel %vm62_vm0, %v23_v1, 0  ;;  %34 = vperm.xlu0 %224, %v28_v4  }
   0x5   :  { %206 = vmatpush3.bf16.xpose.msra.mxu0 %v70_v5 }
   0x6   :  { %10 = vsyncpa [#allocation3], 0  ;;  %v29_v7 = vld [vmem:[%s331_s2 + $0x8] sm:$0xff]  ;;  %44 = vperm.xlu1 %225, %v30_v6   ;;  %v31_v8 = vld [vmem:[%s331_s2 + $0x18] sm:$0xff]  ;;  %v253_v11 = vmov 0.0   ;;  %vm254_vm1 = vmmov 0  }
   0x7   :  { %v227_v9 = vld [vmem:[%s330_s1 + $0x8] sm:$0xff]   ;;  %v128_v10 = vld [vmem:[%s333_s4] sm:$0xf]  ;;  %211 = vmatprep.subr.bf16.mxu1 %v253_v11  ;;  %215 = vmatprep.mubr.msk.bf16.mxu1 %vm254_vm1, %v253_v11  ;;  %vm134_vm2 = vcmask 261120   ;;  %s255_s4 = smov [#allocation2]   ;;  %vm178_vm3 = vcmask 60416  }
   0x8   :  { %39 = vperm.xlu0 %224, %v29_v7   ;;  %v125_v30 = vld [vmem:[%s332_s3] sm:$0x3]  ;;  %s186_s8 = sshll.u32 %s255_s4, 4  ;;  %s187_s8 = int_to_ptr.vmem [resolvable:$true] %s186_s8 }
   0x9   :  { %s228_s9 = scalar_lea.vmem %s187_s8, 64  ;;  %p233_p1 = scmp.lt.s32.totalorder %s187_s8, %s187_s8 }
   0xa   :  { %49 = vperm.xlu1 %225, %v31_v8   ;;  %p229_p0 = scmp.ne.s32.totalorder %s187_s8, %s228_s9  ;;  %p234_p2 = scmp.lt.s32.totalorder %s228_s9, %s228_s9 }
   0xc   :  { %208 = vmatmul.mubr.msk.bf16.vlgmr.msra.gmra.mrb[0].mxu0 %vm62_vm0, %v227_v9  ;;  %131 = vperm.xlu0 %224, %v128_v10   ;;  %p235_p3 = por %p234_p2, %p233_p1 }
   0xe   :  { %p236_p4 = pnand %p235_p3, %p229_p0 }
  0x83   :  { %v35_v13 = vpop.permute.xlu0 %34 }
  0x85   :  { %v45_v12 = vpop.permute.xlu1 %44 }
  0x87   :  { %v40_v20 = vpop.permute.xlu0 %39 }
  0x89   :  { %v50_v15 = vpop.permute.xlu1 %49 }
  0x8b   :  { %v132_v31 = vpop.permute.xlu0 %131 }
  0xdf   :  { %v209_v14 = vpop.f32.mrb[0].mxu0 }
  0xe0   :  { %v115_v16 = vadd.f32 %v209_v14, %v45_v12  ;;  %v106_v17 = vpop.f32.mrb[1].mxu0 }
  0xe1   :  { %v107_v18 = vadd.f32 %v106_v17, %v35_v13  ;;  %v210_v19 = vpop.f32.mrb[2].mxu0 }
  0xe2   :  { %v118_v21 = vadd.f32 %v210_v19, %v50_v15  ;;  %v109_v22 = vpop.f32.mrb[3].mxu0  ;;  %v123_v24 = vmax.f32 %v115_v16, 0.0 }
  0xe3   :  { %v110_v23 = vadd.f32 %v109_v22, %v40_v20  ;;  %v121_v26 = vmax.f32 %v107_v18, 0.0 }
  0xe4   :  { %v124_v25 = vmax.f32 %v118_v21, 0.0 }
  0xe5   :  { %v122_v27 = vmax.f32 %v110_v23, 0.0 }
  0xe6   :  { %v127_v28 = vpack.c.bf16 %v124_v25, %v123_v24 }
  0xe7   :  { %v126_v29 = vpack.c.bf16 %v122_v27, %v121_v26 }
  0xe9   :  { %212 = vmatpush3.bf16.msra.mxu1 %v126_v29 }
  0xea   :  { %213 = vmatprep.subr.bf16.mxu1 %v253_v11 }
  0xed   :  { %214 = vmatpush3.bf16.msra.mxu1 %v127_v28 }
  0xf0   :  { %216 = vmatmul.mubr.msk.bf16.vlgmr.msra.gmra.mrb[0].mxu1 %vm134_vm2, %v125_v30 }
 0x1c3   :  { %v172_v32 = vpop.f32.mrb[0].mxu1 }
 0x1c4   :  { %v173_v33 = vadd.f32 %v172_v32, %v132_v31  ;;  %v217_v34 = vpop.f32.mrb[1].mxu1 }
 0x1c5   :  { %v175_v35 = vpop.f32.mrb[2].mxu1 }
 0x1c6   :  { %v218_v36 = vpop.f32.mrb[3].mxu1  ;;  %179 = vst.msk [vmem:[#allocation2] sm:$0xf] %vm178_vm3, %v173_v33 }
 0x1c7   :  { %239 = shalt.err (!%p236_p4)
}
 0x1c8   :  { %s240_s11 = scalar_lea.hbm %s334_s5, 64 }
 0x1c9   :  { %p241_p5 = scmp.ne.s32.totalorder %s334_s5, %s240_s11  ;;  %p244_p6 = scmp.lt.u32.totalorder %s240_s11, %s334_s5 }
 0x1cb   :  { %p246_p7 = pnand %p244_p6, %p241_p5 }
 0x1cd   :  { %249 = shalt.err (!%p246_p7)
}
 0x1ce   :  { %189 = dma.vmem_to_hbm [thread:$0]  %s187_s8, 64, %s334_s5, [#allocation3]  }
 0x1cf   :  { %250 = dma.done.wait [#allocation3], 64  }
 0x1d0   :  { %251 = vsyncadd [#allocation3], 4294967232 }
 0x1d1   :  { %193 = vsyncpa [#allocation3], 1 }

</bundles_post_ra>
